<compile_context>
chip_gen: v7x
topology: tpu7x:2x2x1
jax: 0.10.0
libtpu: 0.0.40
codegen_flags: <defaults>
</compile_context>

<pallas_src>
import functools

import jax
import jax.numpy as jnp
from jax import lax
from jax.experimental import pallas as pl
from jax.experimental.pallas import tpu as pltpu


def trans_basic_block_kernel(x_ref, w1_ref, b1_ref, w2_ref, b2_ref, o_ref, *,
                             img_h):
    """Bt images per grid step, lane-dense (row, W*C) layout.

    x_ref  : (Bt*H, W*Cin)       rows of Bt images, lane-dense (lane = w*C + c)
    w*_ref : (W*Cin, 3*W*Cout)   N-stacked block-banded conv weights
                                 [band(ky=0) | band(ky=1) | band(ky=2)],
                                 BN scale folded into the output columns
    b*_ref : (1, W*Cout)         folded BN shift, tiled over W
    o_ref  : (Bt*H, W*Cout)
    """
    m = x_ref.shape[0]
    x = x_ref[...]                                            # (M, W*Cin) f32

    # Per-image vertical SAME-padding masks (also isolate the Bt images stacked
    # in this block): rows with r % H == 0 have no row above, rows with
    # r % H == H-1 have no row below.
    row = lax.broadcasted_iota(jnp.int32, (m, 1), 0)
    no_above = (row % img_h) == 0                             # (M, 1) bool
    no_below = (row % img_h) == (img_h - 1)                   # (M, 1) bool

    def conv_bn(inp, w_ref, b_ref):
        n = w_ref.shape[1] // 3
        y = jnp.dot(inp.astype(w_ref.dtype), w_ref[...],
                    preferred_element_type=jnp.float32)       # (M, 3*N) one MXU pass
        y_up, y_mid, y_dn = y[:, :n], y[:, n:2 * n], y[:, 2 * n:]
        # out[r] = y_up[r-1] + y_mid[r] + y_dn[r+1], zero at image borders.
        from_above = jnp.where(no_above, 0.0, jnp.roll(y_up, 1, axis=0))
        from_below = jnp.where(no_below, 0.0, jnp.roll(y_dn, -1, axis=0))
        return y_mid + from_above + from_below + b_ref[...]

    # conv1 -> bn1 -> relu
    h = jnp.maximum(conv_bn(x, w1_ref, b1_ref), 0.0)          # (M, W*Cin)
    # conv2 -> bn2
    out = conv_bn(h, w2_ref, b2_ref)                          # (M, W*Cout)
    # identity residual (stride=1, upsample=None => Cin == Cout) + final relu
    o_ref[...] = jnp.maximum(out + x, 0.0)


def _fold_bn(bn, eps):
    """Eval-mode BN -> per-channel (scale, shift)."""
    gamma, beta, mean, var = bn
    scale = gamma / jnp.sqrt(var + eps)
    shift = beta - mean * scale
    return scale, shift


def _banded_stacked_weights(w_hwio, scale, width, dtype):
    """(3,3,Cin,Cout) HWIO 3x3 kernel -> (W*Cin, 3*W*Cout) N-stacked band.

    band[ky][w_in*Cin + ci, w_out*Cout + co]
        = scale[co] * w[ky, w_in - w_out + 1, ci, co]   if |w_in - w_out| <= 1
        = 0 otherwise (which also implements SAME padding in W).
    The three ky bands are concatenated along the output (N) axis.
    """
    cin, cout = w_hwio.shape[2], w_hwio.shape[3]
    w = w_hwio * scale[None, None, None, :]                   # fold BN scale
    w_in = jnp.arange(width)[:, None]
    w_out = jnp.arange(width)[None, :]
    kx = w_in - w_out + 1                                     # (Win, Wout)
    valid = ((kx >= 0) & (kx <= 2)).astype(w.dtype)
    taps = w[:, jnp.clip(kx, 0, 2), :, :]                     # (3, Win, Wout, Cin, Cout)
    taps = taps * valid[None, :, :, None, None]
    taps = jnp.transpose(taps, (0, 1, 3, 2, 4))               # (3, Win, Cin, Wout, Cout)
    bands = taps.reshape(3, width * cin, width * cout)
    return jnp.concatenate([bands[0], bands[1], bands[2]], axis=1).astype(dtype)


def trans_basic_block(x_nhwc, w1_hwio, bn1, w2_hwio, bn2, *, eps=1e-5,
                      batch_tile=None, matmul_dtype=jnp.float32):
    """x_nhwc: (B, H, W, Cin) float32.  Returns (B, H, W, Cout)."""
    B, H, W, C = x_nhwc.shape
    assert w1_hwio.shape == (3, 3, C, C), "conv1 is conv3x3(inplanes, inplanes)"
    Cout = w2_hwio.shape[-1]
    assert w2_hwio.shape[:3] == (3, 3, C)
    assert Cout == C, "identity-residual path requires Cin == Cout"

    if batch_tile is None:
        # >= 2 grid steps so both v7x TensorCores get work; per-step M is still
        # (B/2)*H rows which amortizes step overhead on v5e/v6e as well.
        batch_tile = B // 2 if (B % 2 == 0 and B >= 2) else 1
    assert B % batch_tile == 0

    s1, b1 = _fold_bn(bn1, eps)
    s2, b2 = _fold_bn(bn2, eps)
    w1s = _banded_stacked_weights(w1_hwio, s1, W, matmul_dtype)   # (W*C, 3*W*C)
    w2s = _banded_stacked_weights(w2_hwio, s2, W, matmul_dtype)   # (W*C, 3*W*Cout)
    b1 = jnp.tile(b1, W).reshape(1, W * C).astype(jnp.float32)
    b2 = jnp.tile(b2, W).reshape(1, W * Cout).astype(jnp.float32)

    x2d = x_nhwc.reshape(B * H, W * C).astype(jnp.float32)   # free metadata reshape
    m_blk = batch_tile * H

    kernel = functools.partial(trans_basic_block_kernel, img_h=H)
    out = pl.pallas_call(
        kernel,
        out_shape=jax.ShapeDtypeStruct((B * H, W * Cout), jnp.float32),
        grid=(B // batch_tile,),
        in_specs=[
            pl.BlockSpec((m_blk, W * C), lambda b: (b, 0)),
            # grid-constant (VMEM-resident) weight / bias streams
            pl.BlockSpec((W * C, 3 * W * C), lambda b: (0, 0)),
            pl.BlockSpec((1, W * C), lambda b: (0, 0)),
            pl.BlockSpec((W * C, 3 * W * Cout), lambda b: (0, 0)),
            pl.BlockSpec((1, W * Cout), lambda b: (0, 0)),
        ],
        out_specs=pl.BlockSpec((m_blk, W * Cout), lambda b: (b, 0)),
        compiler_params=pltpu.CompilerParams(
            dimension_semantics=("parallel",)),
    )(x2d, w1s, b1, w2s, b2)

    return out.reshape(B, H, W, Cout)


def reference(x_nhwc, w1_hwio, bn1, w2_hwio, bn2, eps=1e-5):
    """Pure-JAX NHWC reference matching the PyTorch forward (eval-mode BN)."""
    g1, be1, m1, v1 = bn1
    g2, be2, m2, v2 = bn2
    dn = ('NHWC', 'HWIO', 'NHWC')
    out = lax.conv_general_dilated(x_nhwc, w1_hwio, (1, 1), 'SAME',
                                   dimension_numbers=dn)
    out = (out - m1) / jnp.sqrt(v1 + eps) * g1 + be1
    out = jnp.maximum(out, 0.0)
    out = lax.conv_general_dilated(out, w2_hwio, (1, 1), 'SAME',
                                   dimension_numbers=dn)
    out = (out - m2) / jnp.sqrt(v2 + eps) * g2 + be2
    return jnp.maximum(out + x_nhwc, 0.0)


if __name__ == "__main__":
    # inplanes = planes = 8, stride = 1, upsample = None; W*C = 128 (lane-dense)
    B, C, H, W = 4, 8, 16, 16
    key = jax.random.PRNGKey(0)
    kx, kw1, kw2, kg1, kb1, km1, kv1, kg2, kb2, km2, kv2 = jax.random.split(key, 11)

    # NHWC activations (the PyTorch module's NCHW tensor, transposed once upstream).
    x = jax.random.normal(kx, (B, H, W, C), jnp.float32)

    # conv3x3 weights in HWIO (values synthetic; PyTorch stores OIHW)
    w1 = jax.random.normal(kw1, (3, 3, C, C), jnp.float32) * 0.1
    w2 = jax.random.normal(kw2, (3, 3, C, C), jnp.float32) * 0.1

    # BatchNorm params (gamma, beta, running_mean, running_var), eval mode
    bn1 = (1.0 + 0.1 * jax.random.normal(kg1, (C,), jnp.float32),
           0.1 * jax.random.normal(kb1, (C,), jnp.float32),
           0.1 * jax.random.normal(km1, (C,), jnp.float32),
           1.0 + 0.1 * jax.nn.softplus(jax.random.normal(kv1, (C,), jnp.float32)))
    bn2 = (1.0 + 0.1 * jax.random.normal(kg2, (C,), jnp.float32),
           0.1 * jax.random.normal(kb2, (C,), jnp.float32),
           0.1 * jax.random.normal(km2, (C,), jnp.float32),
           1.0 + 0.1 * jax.nn.softplus(jax.random.normal(kv2, (C,), jnp.float32)))

    ref = jax.block_until_ready(reference(x, w1, bn1, w2, bn2))

    # f32 path: matches the PyTorch module's f32 numerics.
    out = jax.block_until_ready(trans_basic_block(x, w1, bn1, w2, bn2))
    assert out.shape == (B, H, W, C)
    err = float(jnp.max(jnp.abs(out - ref)))
    assert jnp.allclose(out, ref, rtol=1e-4, atol=1e-4), f"f32 max abs err {err}"

    # bf16 weight/operand path (f32 accumulate + f32 epilogue): halves weight DMA
    # and runs the MXU at native bf16 rate; tolerance is looser because the conv
    # operands themselves are rounded to bf16.
    out_bf16 = jax.block_until_ready(
        trans_basic_block(x, w1, bn1, w2, bn2, matmul_dtype=jnp.bfloat16))
    err_bf16 = float(jnp.max(jnp.abs(out_bf16 - ref)))
    assert jnp.allclose(out_bf16, ref, rtol=2e-2, atol=5e-2), \
        f"bf16 max abs err {err_bf16}"

    print("KERNEL_OK")
</pallas_src>

<mosaic_0001>
module attributes {stable_mosaic.version = 11 : i64} {
  func.func @trans_basic_block_kernel(%arg0: i32, %arg1: memref<32x128xf32, #tpu.memory_space<vmem>>, %arg2: memref<128x384xf32, #tpu.memory_space<vmem>>, %arg3: memref<1x128xf32, #tpu.memory_space<vmem>>, %arg4: memref<128x384xf32, #tpu.memory_space<vmem>>, %arg5: memref<1x128xf32, #tpu.memory_space<vmem>>, %arg6: memref<32x128xf32, #tpu.memory_space<vmem>>) attributes {dimension_semantics = [#tpu.dimension_semantics<parallel>], iteration_bounds = array<i64: 2>, scalar_prefetch = 0 : i64, scratch_operands = 0 : i64, tpu.core_type = #tpu.core_type<tc>, window_params = [{transform_indices = @transform_0, window_bounds = array<i64: 32, 128>}, {pipeline_mode = #tpu.pipeline_mode<synchronous>, transform_indices = @transform_1, window_bounds = array<i64: 128, 384>}, {pipeline_mode = #tpu.pipeline_mode<synchronous>, transform_indices = @transform_2, window_bounds = array<i64: 1, 128>}, {pipeline_mode = #tpu.pipeline_mode<synchronous>, transform_indices = @transform_3, window_bounds = array<i64: 128, 384>}, {pipeline_mode = #tpu.pipeline_mode<synchronous>, transform_indices = @transform_4, window_bounds = array<i64: 1, 128>}, {transform_indices = @transform_5, window_bounds = array<i64: 32, 128>}]} {
    %c0 = arith.constant 0 : index
    %c0_0 = arith.constant 0 : index
    %0 = vector.load %arg1[%c0, %c0_0] : memref<32x128xf32, #tpu.memory_space<vmem>>, vector<32x128xf32>
    %1 = tpu.iota {dimensions = array<i32: 0>} : vector<32x1xi32>
    %c16_i32 = arith.constant 16 : i32
    %c0_i32 = arith.constant 0 : i32
    %2 = arith.cmpi eq, %c16_i32, %c0_i32 : i32
    %c1_i32 = arith.constant 1 : i32
    %3 = arith.select %2, %c1_i32, %c16_i32 : i32
    %4 = vector.broadcast %3 : i32 to vector<32x1xi32>
    %5 = arith.remsi %1, %4 : vector<32x1xi32>
    %c0_i32_1 = arith.constant 0 : i32
    %6 = vector.broadcast %c0_i32_1 : i32 to vector<32x1xi32>
    %7 = arith.cmpi ne, %5, %6 : vector<32x1xi32>
    %c0_i32_2 = arith.constant 0 : i32
    %8 = vector.broadcast %c0_i32_2 : i32 to vector<32x1xi32>
    %9 = arith.cmpi slt, %5, %8 : vector<32x1xi32>
    %c0_i32_3 = arith.constant 0 : i32
    %10 = arith.cmpi slt, %3, %c0_i32_3 : i32
    %11 = vector.broadcast %10 : i1 to vector<32x1xi1>
    %12 = vector.broadcast %11 : vector<32x1xi1> to vector<32x1xi1>
    %13 = arith.xori %9, %12 : vector<32x1xi1>
    %14 = arith.andi %13, %7 : vector<32x1xi1>
    %15 = vector.broadcast %3 : i32 to vector<32x1xi32>
    %16 = arith.addi %5, %15 : vector<32x1xi32>
    %17 = arith.select %14, %16, %5 : vector<32x1xi1>, vector<32x1xi32>
    %c0_i32_4 = arith.constant 0 : i32
    %18 = vector.broadcast %c0_i32_4 : i32 to vector<32x1xi32>
    %19 = arith.cmpi eq, %17, %18 : vector<32x1xi32>
    %c16_i32_5 = arith.constant 16 : i32
    %c0_i32_6 = arith.constant 0 : i32
    %20 = arith.cmpi eq, %c16_i32_5, %c0_i32_6 : i32
    %c1_i32_7 = arith.constant 1 : i32
    %21 = arith.select %20, %c1_i32_7, %c16_i32_5 : i32
    %22 = vector.broadcast %21 : i32 to vector<32x1xi32>
    %23 = arith.remsi %1, %22 : vector<32x1xi32>
    %c0_i32_8 = arith.constant 0 : i32
    %24 = vector.broadcast %c0_i32_8 : i32 to vector<32x1xi32>
    %25 = arith.cmpi ne, %23, %24 : vector<32x1xi32>
    %c0_i32_9 = arith.constant 0 : i32
    %26 = vector.broadcast %c0_i32_9 : i32 to vector<32x1xi32>
    %27 = arith.cmpi slt, %23, %26 : vector<32x1xi32>
    %c0_i32_10 = arith.constant 0 : i32
    %28 = arith.cmpi slt, %21, %c0_i32_10 : i32
    %29 = vector.broadcast %28 : i1 to vector<32x1xi1>
    %30 = vector.broadcast %29 : vector<32x1xi1> to vector<32x1xi1>
    %31 = arith.xori %27, %30 : vector<32x1xi1>
    %32 = arith.andi %31, %25 : vector<32x1xi1>
    %33 = vector.broadcast %21 : i32 to vector<32x1xi32>
    %34 = arith.addi %23, %33 : vector<32x1xi32>
    %35 = arith.select %32, %34, %23 : vector<32x1xi1>, vector<32x1xi32>
    %c15_i32 = arith.constant 15 : i32
    %36 = vector.broadcast %c15_i32 : i32 to vector<32x1xi32>
    %37 = arith.cmpi eq, %35, %36 : vector<32x1xi32>
    %c0_11 = arith.constant 0 : index
    %c0_12 = arith.constant 0 : index
    %38 = vector.load %arg2[%c0_11, %c0_12] : memref<128x384xf32, #tpu.memory_space<vmem>>, vector<128x384xf32>
    %cst = arith.constant dense<0.000000e+00> : vector<32x384xf32>
    %39 = tpu.matmul %0, %38, %cst {dimension_numbers = #tpu.dot_dimension_numbers<[1], [0], [0], [1], [0, 0, 1, 1], [], []>} : vector<32x128xf32>, vector<128x384xf32>, vector<32x384xf32> -> vector<32x384xf32>
    %40 = vector.extract_strided_slice %39 {offsets = [0, 0], sizes = [32, 128], strides = [1, 1]} : vector<32x384xf32> to vector<32x128xf32>
    %41 = vector.extract_strided_slice %39 {offsets = [0, 128], sizes = [32, 128], strides = [1, 1]} : vector<32x384xf32> to vector<32x128xf32>
    %42 = vector.extract_strided_slice %39 {offsets = [0, 256], sizes = [32, 128], strides = [1, 1]} : vector<32x384xf32> to vector<32x128xf32>
    %43 = vector.extract_strided_slice %40 {offsets = [31, 0], sizes = [1, 128], strides = [1, 1]} : vector<32x128xf32> to vector<1x128xf32>
    %44 = vector.extract_strided_slice %40 {offsets = [0, 0], sizes = [31, 128], strides = [1, 1]} : vector<32x128xf32> to vector<31x128xf32>
    %45 = tpu.concatenate %43, %44 in 0 : vector<1x128xf32>, vector<31x128xf32> -> vector<32x128xf32>
    %cst_13 = arith.constant 0.000000e+00 : f32
    %46 = vector.shape_cast %19 : vector<32x1xi1> to vector<32x1xi1>
    %47 = vector.broadcast %46 : vector<32x1xi1> to vector<32x128xi1>
    %48 = vector.broadcast %cst_13 : f32 to vector<32x128xf32>
    %49 = arith.select %47, %48, %45 : vector<32x128xi1>, vector<32x128xf32>
    %50 = vector.extract_strided_slice %42 {offsets = [1, 0], sizes = [31, 128], strides = [1, 1]} : vector<32x128xf32> to vector<31x128xf32>
    %51 = vector.extract_strided_slice %42 {offsets = [0, 0], sizes = [1, 128], strides = [1, 1]} : vector<32x128xf32> to vector<1x128xf32>
    %52 = tpu.concatenate %50, %51 in 0 : vector<31x128xf32>, vector<1x128xf32> -> vector<32x128xf32>
    %cst_14 = arith.constant 0.000000e+00 : f32
    %53 = vector.shape_cast %37 : vector<32x1xi1> to vector<32x1xi1>
    %54 = vector.broadcast %53 : vector<32x1xi1> to vector<32x128xi1>
    %55 = vector.broadcast %cst_14 : f32 to vector<32x128xf32>
    %56 = arith.select %54, %55, %52 : vector<32x128xi1>, vector<32x128xf32>
    %57 = arith.addf %41, %49 : vector<32x128xf32>
    %58 = arith.addf %57, %56 : vector<32x128xf32>
    %c0_15 = arith.constant 0 : index
    %c0_16 = arith.constant 0 : index
    %59 = vector.load %arg3[%c0_15, %c0_16] : memref<1x128xf32, #tpu.memory_space<vmem>>, vector<1x128xf32>
    %60 = vector.broadcast %59 : vector<1x128xf32> to vector<32x128xf32>
    %61 = arith.addf %58, %60 : vector<32x128xf32>
    %cst_17 = arith.constant 0.000000e+00 : f32
    %62 = vector.broadcast %cst_17 : f32 to vector<32x128xf32>
    %63 = arith.maximumf %61, %62 : vector<32x128xf32>
    %c0_18 = arith.constant 0 : index
    %c0_19 = arith.constant 0 : index
    %64 = vector.load %arg4[%c0_18, %c0_19] : memref<128x384xf32, #tpu.memory_space<vmem>>, vector<128x384xf32>
    %cst_20 = arith.constant dense<0.000000e+00> : vector<32x384xf32>
    %65 = tpu.matmul %63, %64, %cst_20 {dimension_numbers = #tpu.dot_dimension_numbers<[1], [0], [0], [1], [0, 0, 1, 1], [], []>} : vector<32x128xf32>, vector<128x384xf32>, vector<32x384xf32> -> vector<32x384xf32>
    %66 = vector.extract_strided_slice %65 {offsets = [0, 0], sizes = [32, 128], strides = [1, 1]} : vector<32x384xf32> to vector<32x128xf32>
    %67 = vector.extract_strided_slice %65 {offsets = [0, 128], sizes = [32, 128], strides = [1, 1]} : vector<32x384xf32> to vector<32x128xf32>
    %68 = vector.extract_strided_slice %65 {offsets = [0, 256], sizes = [32, 128], strides = [1, 1]} : vector<32x384xf32> to vector<32x128xf32>
    %69 = vector.extract_strided_slice %66 {offsets = [31, 0], sizes = [1, 128], strides = [1, 1]} : vector<32x128xf32> to vector<1x128xf32>
    %70 = vector.extract_strided_slice %66 {offsets = [0, 0], sizes = [31, 128], strides = [1, 1]} : vector<32x128xf32> to vector<31x128xf32>
    %71 = tpu.concatenate %69, %70 in 0 : vector<1x128xf32>, vector<31x128xf32> -> vector<32x128xf32>
    %cst_21 = arith.constant 0.000000e+00 : f32
    %72 = vector.shape_cast %19 : vector<32x1xi1> to vector<32x1xi1>
    %73 = vector.broadcast %72 : vector<32x1xi1> to vector<32x128xi1>
    %74 = vector.broadcast %cst_21 : f32 to vector<32x128xf32>
    %75 = arith.select %73, %74, %71 : vector<32x128xi1>, vector<32x128xf32>
    %76 = vector.extract_strided_slice %68 {offsets = [1, 0], sizes = [31, 128], strides = [1, 1]} : vector<32x128xf32> to vector<31x128xf32>
    %77 = vector.extract_strided_slice %68 {offsets = [0, 0], sizes = [1, 128], strides = [1, 1]} : vector<32x128xf32> to vector<1x128xf32>
    %78 = tpu.concatenate %76, %77 in 0 : vector<31x128xf32>, vector<1x128xf32> -> vector<32x128xf32>
    %cst_22 = arith.constant 0.000000e+00 : f32
    %79 = vector.shape_cast %37 : vector<32x1xi1> to vector<32x1xi1>
    %80 = vector.broadcast %79 : vector<32x1xi1> to vector<32x128xi1>
    %81 = vector.broadcast %cst_22 : f32 to vector<32x128xf32>
    %82 = arith.select %80, %81, %78 : vector<32x128xi1>, vector<32x128xf32>
    %83 = arith.addf %67, %75 : vector<32x128xf32>
    %84 = arith.addf %83, %82 : vector<32x128xf32>
    %c0_23 = arith.constant 0 : index
    %c0_24 = arith.constant 0 : index
    %85 = vector.load %arg5[%c0_23, %c0_24] : memref<1x128xf32, #tpu.memory_space<vmem>>, vector<1x128xf32>
    %86 = vector.broadcast %85 : vector<1x128xf32> to vector<32x128xf32>
    %87 = arith.addf %84, %86 : vector<32x128xf32>
    %88 = arith.addf %87, %0 : vector<32x128xf32>
    %cst_25 = arith.constant 0.000000e+00 : f32
    %89 = vector.broadcast %cst_25 : f32 to vector<32x128xf32>
    %90 = arith.maximumf %88, %89 : vector<32x128xf32>
    %c0_26 = arith.constant 0 : index
    %c0_27 = arith.constant 0 : index
    %91 = vector.load %arg6[%c0_26, %c0_27] : memref<32x128xf32, #tpu.memory_space<vmem>>, vector<32x128xf32>
    tpu.vector_store %arg6[%c0_26, %c0_27], %90 {strides = array<i32>} : memref<32x128xf32, #tpu.memory_space<vmem>>, vector<32x128xf32>,
    return
  }
  func.func @transform_0(%arg0: i32) -> (i32, i32) {
    %c0_i32 = arith.constant 0 : i32
    %c0_i32_0 = arith.constant 0 : i32
    return %arg0, %c0_i32 : i32, i32
  }
  func.func @transform_1(%arg0: i32) -> (i32, i32) {
    %c0_i32 = arith.constant 0 : i32
    %c0_i32_0 = arith.constant 0 : i32
    %c0_i32_1 = arith.constant 0 : i32
    return %c0_i32, %c0_i32_0 : i32, i32
  }
  func.func @transform_2(%arg0: i32) -> (i32, i32) {
    %c0_i32 = arith.constant 0 : i32
    %c0_i32_0 = arith.constant 0 : i32
    %c0_i32_1 = arith.constant 0 : i32
    return %c0_i32, %c0_i32_0 : i32, i32
  }
  func.func @transform_3(%arg0: i32) -> (i32, i32) {
    %c0_i32 = arith.constant 0 : i32
    %c0_i32_0 = arith.constant 0 : i32
    %c0_i32_1 = arith.constant 0 : i32
    return %c0_i32, %c0_i32_0 : i32, i32
  }
  func.func @transform_4(%arg0: i32) -> (i32, i32) {
    %c0_i32 = arith.constant 0 : i32
    %c0_i32_0 = arith.constant 0 : i32
    %c0_i32_1 = arith.constant 0 : i32
    return %c0_i32, %c0_i32_0 : i32, i32
  }
  func.func @transform_5(%arg0: i32) -> (i32, i32) {
    %c0_i32 = arith.constant 0 : i32
    %c0_i32_0 = arith.constant 0 : i32
    return %arg0, %c0_i32 : i32, i32
  }
}

</mosaic_0001>

<bundles_post_ra>
// kernel: tpu_custom_call.1
= control target key start
LH: loop header
LB: loop body
LE: loop exit
PB: predicated region body
PF: predicated region fallthrough
CT: control target
= control target key end

     0   :  { %10 = vsyncpa [#allocation3], 0  ;;  %s1910_s0 = inlined_call_operand.hbm [shape: f32[64,128], index: 0, kind: input, shape index: {}]   ;;  %s1911_s1 = inlined_call_operand.hbm [shape: f32[128,384], index: 1, kind: input, shape index: {}]   ;;  %s1912_s2 = inlined_call_operand.vmem [shape: f32[1,128], index: 2, kind: input, shape index: {}]   ;;  %s1913_s3 = inlined_call_operand.hbm [shape: f32[128,384], index: 3, kind: input, shape index: {}]   ;;  %s1914_s4 = inlined_call_operand.vmem [shape: f32[1,128], index: 4, kind: input, shape index: {}]   ;;  %s1915_s5 = inlined_call_operand.hbm [shape: f32[64,128], index: 5, kind: output, shape index: {}]  }
   0x1   :  { %12 = vsyncpa [#allocation3 + $0x1], 0 }
   0x2   :  { %13 = vsyncpa [#allocation6], 0 }
   0x3   :  { %14 = vsyncpa [#allocation4], 0 }
   0x4   :  { %16 = vsyncpa [#allocation4 + $0x1], 0  ;;  %s1584_s18 = smov 0   ;;  %s1586_s19 = smov 0  }
   0x5   :  { %s1588_s20 = smov 0   ;;  %s1590_s21 = smov 0  }
   0x6 LB: > { %s1605_s22 = sadd.s32 4294967295, %s1541_s21   ;;  %s1045_s23 = sadd.s32 4294967294, %s1541_s21   ;;  %s1541_s21 = sphi %s1590_s21, %s1943_s21   ;;  %s1537_s20 = sphi %s1588_s20, %s1942_s20   ;;  %s1533_s19 = sphi %s1586_s19, %s1941_s19   ;;  %s1529_s18 = sphi %s1584_s18, %s1940_s18  }
   0x7   : > { %p42_p0 = scmp.ne.s32.totalorder %s1533_s19, %s1529_s18  ;;  %p1916_p1 = scmp.eq.s32.totalorder %s1605_s22, 0 }
   0x8   : > { %p156_p3 = scmp.eq.s32.totalorder %s1045_s23, 1  ;;  %p1046_p5 = scmp.ge.s32.totalorder %s1541_s21, 1 }
   0x9   : > { %p1614_p4 = por %p1916_p1, %p42_p0  ;;  %p163_p7 = scmp.lt.s32.totalorder %s1541_s21, 3 }
   0xa   : > { %p1619_p6 = por %p156_p3, %p42_p0  ;;  %s1543_s27 = smov [#allocation5]  }
   0xb   : > { %s1919_s24 = scalar_select %p1614_p4, 1, 0 }
   0xc   : > { %s1920_s25 = scalar_select %p1619_p6, 1, 0 }
   0xd   : > { %p1624_p8 = pnand %p1046_p5, %p163_p7  ;;  %s175_s28 = sshll.u32 %s1543_s27, 4  ;;  %s1628_s28 = int_to_ptr.vmem [resolvable:$true] %s175_s28 }
   0xe   : > { %s1544_s30 = smov [#allocation7]   ;;  %s1385_s9 = scalar_lea.hbm %s1911_s1, 6144 }
   0xf   : > { %p1323_p9 = pneg %p1624_p8  ;;  %s191_s6 = sshll.u32 %s1544_s30, 4  ;;  %s1639_s6 = int_to_ptr.vmem [resolvable:$true] %s191_s6 }
  0x10   : > { %p1386_p12 = scmp.ne.s32.totalorder %s1911_s1, %s1385_s9  ;;  %p1392_p5 = scmp.lt.u32.totalorder %s1385_s9, %s1911_s1 }
  0x11   : > { %p1635_p11 = pnand %p1323_p9, %p1916_p1 }
  0x13   : > { %p1387_p13 = pneg %p1635_p11 }
  0x15   : > { %p1388_p0 = pnand %p1387_p13, %p1386_p12 }
  0x17   : > { %p1389_p3 = pneg %p1388_p0 }
  0x19   : > { %p1394_p7 = pnand %p1392_p5, %p1389_p3 }
  0x1b   : > { %1397 = shalt.err (!%p1394_p7)
}
  0x1c   : > { %s1398_s14 = scalar_lea.vmem %s1628_s28, 6144  ;;  %p1406_p2 = scmp.lt.s32.totalorder %s1628_s28, %s1628_s28 }
  0x1d   : > { %p1399_p9 = scmp.ne.s32.totalorder %s1628_s28, %s1398_s14  ;;  %p1407_p12 = scmp.lt.s32.totalorder %s1398_s14, %s1398_s14 }
  0x1f   : > { %p1401_p10 = pnand %p1399_p9, %p1387_p13  ;;  %p1408_p0 = por %p1407_p12, %p1406_p2 }
  0x21   : > { %p1402_p1 = pneg %p1401_p10 }
  0x23   : > { %p1409_p6 = pnand %p1408_p0, %p1402_p1 }
  0x25   : > { %1412 = shalt.err (!%p1409_p6)
}
  0x26   : > { %s1545_s15 = smov 384   ;;  %s1546_s16 = smov 24  }
  0x27   : > { %1326 = dma.hbm_to_vmem [thread:$0]  (!%p1635_p11), %s1911_s1, 6144, %s1628_s28, [#allocation6], %s1545_s15, %s1545_s15, %s1546_s16  }
  0x28   : > { %s1413_s7 = scalar_lea.hbm %s1913_s3, 6144 }
  0x29   : > { %p1414_p2 = scmp.ne.s32.totalorder %s1913_s3, %s1413_s7  ;;  %p1420_p10 = scmp.lt.u32.totalorder %s1413_s7, %s1913_s3 }
  0x2b   : > { %p1416_p1 = pnand %p1414_p2, %p1387_p13 }
  0x2d   : > { %p1417_p6 = pneg %p1416_p1 }
  0x2f   : > { %p1422_p3 = pnand %p1420_p10, %p1417_p6 }
  0x31   : > { %1425 = shalt.err (!%p1422_p3)
}
  0x32   : > { %s1426_s28 = scalar_lea.vmem %s1639_s6, 6144  ;;  %p1434_p12 = scmp.lt.s32.totalorder %s1639_s6, %s1639_s6 }
  0x33   : > { %p1427_p5 = scmp.ne.s32.totalorder %s1639_s6, %s1426_s28  ;;  %p1435_p0 = scmp.lt.s32.totalorder %s1426_s28, %s1426_s28 }
  0x35   : > { %p1429_p7 = pnand %p1427_p5, %p1387_p13  ;;  %p1436_p2 = por %p1435_p0, %p1434_p12 }
  0x37   : > { %p1430_p9 = pneg %p1429_p7 }
  0x39   : > { %p1437_p1 = pnand %p1436_p2, %p1430_p9 }
  0x3b   : > { %1440 = shalt.err (!%p1437_p1)
}
  0x3c   : > { %1329 = dma.hbm_to_vmem [thread:$0]  (!%p1635_p11), %s1913_s3, 6144, %s1639_s6, [#allocation6], %s1545_s15, %s1545_s15, %s1546_s16  }
  0x3d   : > { %s1694_s14 = sadd.s32 1, %s1541_s21   ;;  %s29_s29 = sadd.s32 1, %s1537_s20 }
  0x3e   : > { %s26_s17 = ssub.s32 %s1541_s21, %s1694_s14  ;;  %p36_p13 = scmp.ne.s32.totalorder %s1537_s20, %s1533_s19 }
  0x3f   : > { %p27_p6 = scmp.eq.s32.totalorder %s26_s17, 0  ;;  %p37_p10 = scmp.eq.s32.totalorder %s1541_s21, 0 }
  0x40   : > { %p1923_p3 = scmp.eq.s32.totalorder %s1605_s22, 1  ;;  %p1340_p7 = scmp.lt.s32.totalorder %s1541_s21, 2 }
  0x41   : > { %s1710_s27 = scalar_select %p27_p6, %s1537_s20, %s29_s29  }
  0x42   : > { %p1704_p5 = por %p1923_p3, %p36_p13  ;;  %p38_p9 = por %p37_p10, %p36_p13 }
  0x43   : > { %s208_s30 = sand.u32 1, %s1537_s20   ;;  %s1065_s6 = sshll.u32 %s1541_s21, 9 }
  0x44   : > { %s1924_s23 = scalar_select %p1704_p5, 1, 0 }
  0x45   : > { %s1050_s7 = sshll.u32 %s208_s30, 5  ;;  %s1717_s8 = scalar_lea.hbm %s1910_s0, %s1065_s6 }
  0x46   : > { %s212_s9 = scalar_lea.vmem [#allocation2], %s1050_s7  ;;  %p1721_p11 = pnand %p1340_p7, %p38_p9 }
  0x47   : > { %s219_s10 = sshll.u32 %s212_s9, 4  ;;  %s1725_s28 = scalar_lea.sflag [#allocation3], %s208_s30  ;;  %s1719_s10 = int_to_ptr.vmem [resolvable:$true] %s219_s10 }
  0x48   : > { %s1441_s12 = scalar_lea.hbm %s1717_s8, 512  ;;  %p1443_p0 = pneg %p1721_p11 }
  0x49   : > { %p1442_p12 = scmp.ne.s32.totalorder %s1717_s8, %s1441_s12  ;;  %s1446_s17 = scalar_lea.hbm %s1910_s0, 1024 }
  0x4a   : > { %p1447_p13 = scmp.lt.u32.totalorder %s1717_s8, %s1910_s0  ;;  %p1448_p6 = scmp.lt.u32.totalorder %s1446_s17, %s1441_s12 }
  0x4b   : > { %p1444_p2 = pnand %p1443_p0, %p1442_p12  ;;  %p1450_p3 = scmp.lt.u32.totalorder %s1441_s12, %s1717_s8 }
  0x4c   : > { %p1449_p10 = por %p1448_p6, %p1447_p13 }
  0x4d   : > { %p1445_p1 = pneg %p1444_p2 }
  0x4e   : > { %p1451_p7 = por %p1450_p3, %p1449_p10 }
  0x50   : > { %p1452_p9 = pnand %p1451_p7, %p1445_p1 }
  0x52   : > { %1455 = shalt.err (!%p1452_p9)
}
  0x53   : > { %s1456_s30 = scalar_lea.vmem %s1719_s10, 512  ;;  %s1547_s15 = smov [#allocation2]  }
  0x54   : > { %p1457_p12 = scmp.ne.s32.totalorder %s1719_s10, %s1456_s30  ;;  %s1461_s16 = sshll.u32 %s1547_s15, 4  ;;  %s1462_s16 = int_to_ptr.vmem [resolvable:$false] %s1461_s16 }
  0x55   : > { %s1463_s9 = scalar_lea.vmem %s1462_s16, 1024  ;;  %p1464_p4 = scmp.lt.s32.totalorder %s1719_s10, %s1462_s16 }
  0x56   : > { %p1459_p2 = pnand %p1457_p12, %p1443_p0  ;;  %p1465_p13 = scmp.lt.s32.totalorder %s1463_s9, %s1456_s30 }
  0x58   : > { %p1460_p5 = pneg %p1459_p2  ;;  %p1466_p6 = por %p1465_p13, %p1464_p4 }
  0x5a   : > { %p1467_p10 = pnand %p1466_p6, %p1460_p5 }
  0x5c   : > { %1470 = shalt.err (!%p1467_p10)
}
  0x5d   : > { %s1548_s12 = smov 128   ;;  %s1549_s13 = smov 8  }
  0x5e   : > { %1333 = dma.hbm_to_vmem [thread:$0]  (!%p1721_p11), %s1717_s8, 512, %s1719_s10, %s1725_s28, %s1548_s12, %s1548_s12, %s1549_s13  }
  0x5f   : > { %231 = sbr.rel (%p1624_p8) target bundleno = 631 (0x277), region = 40  ;;  %s1756_s29 = sand.u32 (!%p1624_p8), 1, %s1533_s19  }
  0x60   : > { %s1054_s17 = sshll.u32 (!%p1624_p8), %s1756_s29, 5  ;;  %s234_s7 = scalar_lea.sflag (!%p1624_p8), [#allocation3], %s1756_s29 }
  0x61   : > { %s1762_s6 = scalar_lea.vmem (!%p1624_p8), [#allocation2], %s1054_s17  ;;  %p1926_p4 = scmp.ne.s32.totalorder (!%p1624_p8), %s1919_s24, 0 }
  0x66   : > { %1516 = dma.done.wait (%p1926_p4), %s234_s7, 512  }
  0x67   : > { %1518 = vsyncadd (%p1926_p4), %s234_s7, 4294966784  ;;  %p1927_p5 = scmp.eq.s32.totalorder %s1605_s22, 0 }
  0x69   : > { %1520 = dma.done.wait (%p1927_p5), [#allocation6], 12288   ;;  %p1928_p8 = pmov %p1927_p5 }
  0x6a   : > { %v1550_v0 = vmov 0.0   ;;  %v340_v1 = vld [vmem:[#allocation5 + $0x8] sm:$0xff]  ;;  %v343_v2 = vld [vmem:[#allocation5 + $0x20] sm:$0xff]  ;;  %v341_v3 = vld [vmem:[#allocation5 + $0x10] sm:$0xff]  ;;  %vm595_vm0 = vcmask 1046528   ;;  %vm567_vm1 = vcmask 1040384  }
  0x6b   : > { %1522 = vsyncadd (%p1928_p8), [#allocation6], 4294955008  ;;  %451 = vmatprep.mubr.f32.mxu0 %v1550_v0  ;;  %v1183_v4 = vpack.c.bf16 %v343_v2, %v340_v1  ;;  %v344_v5 = vld [vmem:[#allocation5 + $0x28] sm:$0xff]  ;;  %v339_v6 = vld [vmem:[#allocation5] sm:$0xff]  ;;  %s271_s11 = scalar_lea.vmem [#allocation8], %s1054_s17  ;;  %s1066_s28 = sshll.u32 %s1605_s22, 9 }
  0x6c   : > { %v342_v7 = vld [vmem:[#allocation5 + $0x18] sm:$0xff]  ;;  %v1215_v8 = vpack.c.bf16 %v344_v5, %v341_v3  ;;  %v349_v11 = vld [vmem:[#allocation5 + $0x50] sm:$0xff]  ;;  %v347_v12 = vld [vmem:[#allocation5 + $0x40] sm:$0xff]  ;;  %s953_s30 = sshll.u32 %s271_s11, 4  ;;  %s1864_s9 = scalar_lea.hbm %s1915_s5, %s1066_s28  ;;  %s1866_s30 = int_to_ptr.vmem [resolvable:$true] %s953_s30 }
  0x6d   : > { %v1185_v9 = vpack.c.bf16 %v342_v7, %v339_v6  ;;  %v346_v10 = vld [vmem:[#allocation5 + $0x38] sm:$0xff]  ;;  %1184 = vmatprep.subr.bf16.mxu0 %v1183_v4  ;;  %v345_v15 = vld [vmem:[#allocation5 + $0x30] sm:$0xff]  ;;  %v348_v16 = vld [vmem:[#allocation5 + $0x48] sm:$0xff]  ;;  %s940_s22 = scalar_lea.sflag [#allocation4], %s1756_s29  ;;  %s1471_s12 = scalar_lea.vmem %s1866_s30, 512 }
  0x6e   : > { %v1187_v13 = vpack.c.bf16 %v349_v11, %v346_v10  ;;  %v350_v14 = vld [vmem:[#allocation5 + $0x58] sm:$0xff]  ;;  %1216 = vmatprep.subr.bf16.mxu1 %v1215_v8  ;;  %v1189_v18 = vpack.c.bf16 %v348_v16, %v345_v15  ;;  %v352_v19 = vld [vmem:[#allocation5 + $0x68] sm:$0xff]  ;;  %v355_v20 = vld [vmem:[#allocation5 + $0x80] sm:$0xff]  ;;  %p1472_p11 = scmp.ne.s32.totalorder %s1866_s30, %s1471_s12  ;;  %p1937_p0 = scmp.ne.s32.totalorder %s1924_s23, 0 }
  0x6f   : > { %1186 = vmatpush1.bf16.msra.mxu0 %v1185_v9  ;;  %v1219_v17 = vpack.c.bf16 %v350_v14, %v347_v12  ;;  %v353_v21 = vld [vmem:[#allocation5 + $0x70] sm:$0xff]  ;;  %1218 = vmatpush3.bf16.msra.mxu1 %v1215_v8  ;;  %v1191_v22 = vpack.c.bf16 %v355_v20, %v352_v19  ;;  %v356_v23 = vld [vmem:[#allocation5 + $0x88] sm:$0xff]  ;;  %v351_v24 = vld [vmem:[#allocation5 + $0x60] sm:$0xff]  ;;  %s1551_s13 = smov [#allocation8]  }
  0x70   : > { %1188 = vmatprep.subr.bf16.mxu0 %v1187_v13  ;;  %v354_v25 = vld [vmem:[#allocation5 + $0x78] sm:$0xff]  ;;  %v1223_v26 = vpack.c.bf16 %v356_v23, %v353_v21  ;;  %v361_v28 = vld [vmem:[#allocation5 + $0xb0] sm:$0xff]  ;;  %v359_v29 = vld [vmem:[#allocation5 + $0xa0] sm:$0xff]  ;;  %p1473_p1 = pnand %p1472_p11, %p1937_p0  ;;  %s1475_s17 = sshll.u32 %s1551_s13, 4  ;;  %s1476_s17 = int_to_ptr.vmem [resolvable:$false] %s1475_s17 }
  0x71   : > { %1220 = vmatprep.subr.bf16.mxu1 %v1219_v17  ;;  %v358_v27 = vld [vmem:[#allocation5 + $0x98] sm:$0xff]  ;;  %v1193_v31 = vpack.c.bf16 %v354_v25, %v351_v24  ;;  %v357_v33 = vld [vmem:[#allocation5 + $0x90] sm:$0xff]  ;;  %v360_v34 = vld [vmem:[#allocation5 + $0xa8] sm:$0xff]  ;;  %s1477_s7 = scalar_lea.vmem %s1476_s17, 1024  ;;  %p1478_p7 = scmp.lt.s32.totalorder %s1866_s30, %s1476_s17 }
  0x72   : > { %v362_v30 = vld [vmem:[#allocation5 + $0xb8] sm:$0xff]  ;;  %v1195_v32 = vpack.c.bf16 %v361_v28, %v358_v27  ;;  %v364_v36 = vld [vmem:[#allocation5 + $0xc8] sm:$0xff]  ;;  %v367_v37 = vld [vmem:[#allocation5 + $0xe0] sm:$0xff]  ;;  %v1197_v40 = vpack.c.bf16 %v360_v34, %v357_v33  ;;  %p1474_p3 = pneg %p1473_p1  ;;  %p1479_p9 = scmp.lt.s32.totalorder %s1477_s7, %s1471_s12 }
  0x73   : > { %1190 = vmatpush1.bf16.msra.mxu0 %v1189_v18  ;;  %1222 = vmatpush3.bf16.msra.mxu1 %v1219_v17  ;;  %v1227_v35 = vpack.c.bf16 %v362_v30, %v359_v29  ;;  %v365_v38 = vld [vmem:[#allocation5 + $0xd0] sm:$0xff]  ;;  %v368_v39 = vld [vmem:[#allocation5 + $0xe8] sm:$0xff]  ;;  %v1199_v41 = vpack.c.bf16 %v367_v37, %v364_v36  ;;  %v363_v42 = vld [vmem:[#allocation5 + $0xc0] sm:$0xff] }
  0x74   : > { %1192 = vmatprep.subr.bf16.mxu0 %v1191_v22  ;;  %1224 = vmatprep.subr.bf16.mxu1 %v1223_v26  ;;  %v366_v43 = vld [vmem:[#allocation5 + $0xd8] sm:$0xff]  ;;  %v1231_v44 = vpack.c.bf16 %v368_v39, %v365_v38  ;;  %v373_v46 = vld [vmem:[#allocation5 + $0x110] sm:$0xff]  ;;  %v371_v47 = vld [vmem:[#allocation5 + $0x100] sm:$0xff]  ;;  %p1480_p12 = por %p1479_p9, %p1478_p7 }
  0x75   : > { %v370_v45 = vld [vmem:[#allocation5 + $0xf8] sm:$0xff]  ;;  %v1201_v49 = vpack.c.bf16 %v366_v43, %v363_v42  ;;  %v1774_v50 = vld [vmem:[%s1762_s6] sm:$0xff]  ;;  %v369_v52 = vld [vmem:[#allocation5 + $0xf0] sm:$0xff] }
  0x76   : > { %v374_v48 = vld [vmem:[#allocation5 + $0x118] sm:$0xff]  ;;  %v1203_v51 = vpack.c.bf16 %v373_v46, %v370_v45  ;;  %v372_v53 = vld [vmem:[#allocation5 + $0x108] sm:$0xff]  ;;  %v379_v56 = vld [vmem:[#allocation5 + $0x140] sm:$0xff]  ;;  %1139 = vmatprep.mubr.f32.mxu1 %v1774_v50  ;;  %p1481_p2 = pnand %p1480_p12, %p1474_p3 }
  0x77   : > { %1194 = vmatpush1.bf16.msra.mxu0 %v1193_v31  ;;  %1226 = vmatpush3.bf16.msra.mxu1 %v1223_v26  ;;  %v1235_v54 = vpack.c.bf16 %v374_v48, %v371_v47  ;;  %v376_v55 = vld [vmem:[#allocation5 + $0x128] sm:$0xff]  ;;  %v377_v57 = vld [vmem:[#allocation5 + $0x130] sm:$0xff]  ;;  %v1205_v59 = vpack.c.bf16 %v372_v53, %v369_v52  ;;  %v375_v61 = vld [vmem:[#allocation5 + $0x120] sm:$0xff] }
  0x78   : > { %1196 = vmatprep.subr.bf16.mxu0 %v1195_v32  ;;  %1228 = vmatprep.subr.bf16.mxu1 %v1227_v35  ;;  %v380_v58 = vld [vmem:[#allocation5 + $0x148] sm:$0xff]  ;;  %v1207_v60 = vpack.c.bf16 %v379_v56, %v376_v55  ;;  %v378_v62 = vld [vmem:[#allocation5 + $0x138] sm:$0xff]  ;;  %v385_v2 = vld [vmem:[#allocation5 + $0x170] sm:$0xff] }
  0x79   : > { %v1239_v63 = vpack.c.bf16 %v380_v58, %v377_v57  ;;  %v382_v1 = vld [vmem:[#allocation5 + $0x158] sm:$0xff]  ;;  %v383_v3 = vld [vmem:[#allocation5 + $0x160] sm:$0xff]  ;;  %v1209_v5 = vpack.c.bf16 %v378_v62, %v375_v61  ;;  %v381_v7 = vld [vmem:[#allocation5 + $0x150] sm:$0xff] }
  0x7a   : > { %v386_v4 = vld [vmem:[#allocation5 + $0x178] sm:$0xff]  ;;  %v1211_v6 = vpack.c.bf16 %v385_v2, %v382_v1  ;;  %v384_v8 = vld [vmem:[#allocation5 + $0x168] sm:$0xff]  ;;  %v648_v11 = vld [vmem:[#allocation7 + $0x20] sm:$0xff] }
  0x7b   : > { %1198 = vmatpush1.bf16.msra.mxu0 %v1197_v40  ;;  %1230 = vmatpush3.bf16.msra.mxu1 %v1227_v35  ;;  %v1243_v9 = vpack.c.bf16 %v386_v4, %v383_v3  ;;  %v645_v10 = vld [vmem:[#allocation7 + $0x8] sm:$0xff]  ;;  %v646_v12 = vld [vmem:[#allocation7 + $0x10] sm:$0xff]  ;;  %v1213_v14 = vpack.c.bf16 %v384_v8, %v381_v7  ;;  %v644_v16 = vld [vmem:[#allocation7] sm:$0xff] }
  0x7c   : > { %1200 = vmatprep.subr.bf16.mxu0 %v1199_v41  ;;  %1232 = vmatprep.subr.bf16.mxu1 %v1231_v44  ;;  %v649_v13 = vld [vmem:[#allocation7 + $0x28] sm:$0xff]  ;;  %v1247_v15 = vpack.c.bf16 %v648_v11, %v645_v10  ;;  %v647_v17 = vld [vmem:[#allocation7 + $0x18] sm:$0xff]  ;;  %v654_v20 = vld [vmem:[#allocation7 + $0x50] sm:$0xff] }
  0x7d   : > { %v1279_v18 = vpack.c.bf16 %v649_v13, %v646_v12  ;;  %v651_v19 = vld [vmem:[#allocation7 + $0x38] sm:$0xff]  ;;  %v652_v21 = vld [vmem:[#allocation7 + $0x40] sm:$0xff]  ;;  %v1778_v23 = vld [vmem:[%s1762_s6 + $0x8] sm:$0xff]  ;;  %v1249_v24 = vpack.c.bf16 %v647_v17, %v644_v16 }
  0x7e   : > { %v655_v22 = vld [vmem:[#allocation7 + $0x58] sm:$0xff]  ;;  %v1781_v25 = vld [vmem:[%s1762_s6 + $0x10] sm:$0xff]  ;;  %v1251_v26 = vpack.c.bf16 %v654_v20, %v651_v19  ;;  %v653_v28 = vld [vmem:[#allocation7 + $0x48] sm:$0xff] }
  0x7f   : > { %1202 = vmatpush1.bf16.msra.mxu0 %v1201_v49  ;;  %1234 = vmatpush3.bf16.msra.mxu1 %v1231_v44  ;;  %v650_v27 = vld [vmem:[#allocation7 + $0x30] sm:$0xff]  ;;  %v1283_v29 = vpack.c.bf16 %v655_v22, %v652_v21  ;;  %v1788_v30 = vld [vmem:[%s1762_s6 + $0x18] sm:$0xff]  ;;  %v657_v32 = vld [vmem:[#allocation7 + $0x68] sm:$0xff] }
  0x80   : > { %1204 = vmatprep.subr.bf16.mxu0 %v1203_v51  ;;  %1236 = vmatprep.subr.bf16.mxu1 %v1235_v54  ;;  %v1253_v31 = vpack.c.bf16 %v653_v28, %v650_v27  ;;  %v660_v33 = vld [vmem:[#allocation7 + $0x80] sm:$0xff]  ;;  %v659_v36 = vld [vmem:[#allocation7 + $0x78] sm:$0xff]  ;;  %v658_v37 = vld [vmem:[#allocation7 + $0x70] sm:$0xff] }
  0x81   : > { %v1255_v34 = vpack.c.bf16 %v660_v33, %v657_v32  ;;  %v656_v35 = vld [vmem:[#allocation7 + $0x60] sm:$0xff]  ;;  %v661_v39 = vld [vmem:[#allocation7 + $0x88] sm:$0xff]  ;;  %v663_v41 = vld [vmem:[#allocation7 + $0x98] sm:$0xff] }
  0x82   : > { %v1257_v38 = vpack.c.bf16 %v659_v36, %v656_v35  ;;  %v1287_v40 = vpack.c.bf16 %v661_v39, %v658_v37  ;;  %v666_v42 = vld [vmem:[#allocation7 + $0xb0] sm:$0xff]  ;;  %v665_v45 = vld [vmem:[#allocation7 + $0xa8] sm:$0xff]  ;;  %v664_v46 = vld [vmem:[#allocation7 + $0xa0] sm:$0xff] }
  0x83   : > { %1206 = vmatpush1.bf16.msra.mxu0 %v1205_v59  ;;  %1238 = vmatpush3.bf16.msra.mxu1 %v1235_v54  ;;  %v1259_v43 = vpack.c.bf16 %v666_v42, %v663_v41  ;;  %v662_v44 = vld [vmem:[#allocation7 + $0x90] sm:$0xff]  ;;  %v667_v48 = vld [vmem:[#allocation7 + $0xb8] sm:$0xff]  ;;  %v669_v51 = vld [vmem:[#allocation7 + $0xc8] sm:$0xff] }
  0x84   : > { %1208 = vmatprep.subr.bf16.mxu0 %v1207_v60  ;;  %1240 = vmatprep.subr.bf16.mxu1 %v1239_v63  ;;  %v1261_v47 = vpack.c.bf16 %v665_v45, %v662_v44  ;;  %v1291_v49 = vpack.c.bf16 %v667_v48, %v664_v46  ;;  %v672_v52 = vld [vmem:[#allocation7 + $0xe0] sm:$0xff]  ;;  %v671_v55 = vld [vmem:[#allocation7 + $0xd8] sm:$0xff]  ;;  %v670_v56 = vld [vmem:[#allocation7 + $0xd0] sm:$0xff] }
  0x85   : > { %v1263_v53 = vpack.c.bf16 %v672_v52, %v669_v51  ;;  %v668_v54 = vld [vmem:[#allocation7 + $0xc0] sm:$0xff]  ;;  %v673_v58 = vld [vmem:[#allocation7 + $0xe8] sm:$0xff]  ;;  %v675_v60 = vld [vmem:[#allocation7 + $0xf8] sm:$0xff] }
  0x86   : > { %v1265_v57 = vpack.c.bf16 %v671_v55, %v668_v54  ;;  %v1295_v59 = vpack.c.bf16 %v673_v58, %v670_v56  ;;  %v678_v61 = vld [vmem:[#allocation7 + $0x110] sm:$0xff]  ;;  %v677_v1 = vld [vmem:[#allocation7 + $0x108] sm:$0xff]  ;;  %v676_v2 = vld [vmem:[#allocation7 + $0x100] sm:$0xff] }
  0x87   : > { %1210 = vmatpush1.bf16.msra.mxu0 %v1209_v5  ;;  %1242 = vmatpush3.bf16.msra.mxu1 %v1239_v63  ;;  %v1267_v62 = vpack.c.bf16 %v678_v61, %v675_v60  ;;  %v674_v63 = vld [vmem:[#allocation7 + $0xf0] sm:$0xff]  ;;  %v679_v4 = vld [vmem:[#allocation7 + $0x118] sm:$0xff]  ;;  %v684_v7 = vld [vmem:[#allocation7 + $0x140] sm:$0xff] }
  0x88   : > { %1212 = vmatprep.subr.bf16.mxu0 %v1211_v6  ;;  %1244 = vmatprep.subr.bf16.mxu1 %v1243_v9  ;;  %v1269_v3 = vpack.c.bf16 %v677_v1, %v674_v63  ;;  %v1299_v5 = vpack.c.bf16 %v679_v4, %v676_v2  ;;  %v681_v6 = vld [vmem:[#allocation7 + $0x128] sm:$0xff]  ;;  %v683_v10 = vld [vmem:[#allocation7 + $0x138] sm:$0xff]  ;;  %v682_v11 = vld [vmem:[#allocation7 + $0x130] sm:$0xff] }
  0x89   : > { %v1271_v8 = vpack.c.bf16 %v684_v7, %v681_v6  ;;  %v685_v13 = vld [vmem:[#allocation7 + $0x148] sm:$0xff]  ;;  %v690_v16 = vld [vmem:[#allocation7 + $0x170] sm:$0xff]  ;;  %v688_v20 = vld [vmem:[#allocation7 + $0x160] sm:$0xff] }
  0x8a   : > { %v689_v19 = vld [vmem:[#allocation7 + $0x168] sm:$0xff]  ;;  %v691_v22 = vld [vmem:[#allocation7 + $0x178] sm:$0xff] }
  0x8b   : > { %1214 = vmatpush1.bf16.msra.mxu0 %v1213_v14  ;;  %1246 = vmatpush3.bf16.msra.mxu1 %v1243_v9  ;;  %v680_v9 = vld [vmem:[#allocation7 + $0x120] sm:$0xff]  ;;  %v1303_v14 = vpack.c.bf16 %v685_v13, %v682_v11 }
  0x8c   : > { %1248 = vmatprep.subr.bf16.mxu0 %v1247_v15  ;;  %1280 = vmatprep.subr.bf16.mxu1 %v1279_v18  ;;  %v1273_v12 = vpack.c.bf16 %v683_v10, %v680_v9  ;;  %v687_v15 = vld [vmem:[#allocation7 + $0x158] sm:$0xff] }
  0x8d   : > { %v1275_v17 = vpack.c.bf16 %v690_v16, %v687_v15  ;;  %v1058_v15 = vld [vmem:[%s1912_s2] ss:$0 sm:$0xff] }
  0x8e   : > { %452 = vmatmul.mubr.f32.vlgmr.msra.gmra.mrb[0].mxu0 %v1774_v50  ;;  %1140 = vmatmul.mubr.f32.vlgmr.msra.gmra.mrb[0].mxu1 %v1778_v23 }
  0x8f   : > { %457 = vmatprep.mubr.f32.mxu0 %v1550_v0  ;;  %1142 = vmatprep.mubr.f32.mxu1 %v1781_v25 }
  0x90   : > { %1250 = vmatpush1.bf16.msra.mxu0 %v1249_v24  ;;  %1282 = vmatpush3.bf16.msra.mxu1 %v1279_v18  ;;  %v686_v18 = vld [vmem:[#allocation7 + $0x150] sm:$0xff]  ;;  %v1307_v24 = vpack.c.bf16 %v691_v22, %v688_v20 }
  0x91   : > { %1252 = vmatprep.subr.bf16.mxu0 %v1251_v26  ;;  %1284 = vmatprep.subr.bf16.mxu1 %v1283_v29  ;;  %v1277_v21 = vpack.c.bf16 %v689_v19, %v686_v18  ;;  %v278_v26 = vlaneseq }
  0x92   : > { %458 = vmatmul.mubr.f32.gmra.mrb[2].mxu0 %v1778_v23  ;;  %1143 = vmatmul.mubr.f32.gmra.mrb[2].mxu1 %v1788_v30 }
  0x93   : > { %463 = vmatprep.mubr.f32.mxu0 %v1550_v0  ;;  %v279_v27 = vshrl.u32 %v278_v26, 7 }
  0x94   : > { %1254 = vmatpush1.bf16.msra.mxu0 %v1253_v31  ;;  %1286 = vmatpush3.bf16.msra.mxu1 %v1283_v29 }
  0x95   : > { %1256 = vmatprep.subr.bf16.mxu0 %v1255_v34  ;;  %1288 = vmatprep.subr.bf16.mxu1 %v1287_v40  ;;  %v280_v28 = vadd.s32 8, %v279_v27  ;;  %v281_v31 = vadd.s32 16, %v279_v27  ;;  %v287_v61 = vand.u32 15, %v279_v27 }
  0x96   : > { %464 = vmatmul.mubr.f32.gmra.mrb[4].mxu0 %v1781_v25 }
  0x97   : > { %469 = vmatprep.mubr.f32.mxu0 %v1550_v0  ;;  %v294_v37 = vand.u32 15, %v280_v28  ;;  %v301_v39 = vand.u32 15, %v281_v31  ;;  %vm1819_vm5 = vcmp.eq.s32.totalorder %v287_v61, 0 }
  0x98   : > { %1258 = vmatpush1.bf16.msra.mxu0 %v1257_v38  ;;  %1290 = vmatpush3.bf16.msra.mxu1 %v1287_v40  ;;  %v282_v40 = vadd.s32 24, %v279_v27 }
  0x99   : > { %1260 = vmatprep.subr.bf16.mxu0 %v1259_v43  ;;  %1292 = vmatprep.subr.bf16.mxu1 %v1291_v49  ;;  %vm1799_vm2 = vcmp.eq.s32.totalorder %v294_v37, 15  ;;  %vm1803_vm3 = vcmp.eq.s32.totalorder %v301_v39, 0 }
  0x9a   : > { %470 = vmatmul.mubr.f32.gmra.mrb[6].mxu0 %v1788_v30  ;;  %v308_v55 = vand.u32 15, %v282_v40 }
  0x9b   : > { %756 = vmatprep.mubr.f32.mxu0 %v1550_v0 }
  0x9c   : > { %1262 = vmatpush1.bf16.msra.mxu0 %v1261_v47  ;;  %1294 = vmatpush3.bf16.msra.mxu1 %v1291_v49  ;;  %vm1815_vm4 = vcmp.eq.s32.totalorder %v308_v55, 15 }
  0x9d   : > { %1264 = vmatprep.subr.bf16.mxu0 %v1263_v53  ;;  %1296 = vmatprep.subr.bf16.mxu1 %v1295_v59 }
  0xa0   : > { %1266 = vmatpush1.bf16.msra.mxu0 %v1265_v57  ;;  %1298 = vmatpush3.bf16.msra.mxu1 %v1295_v59 }
  0xa1   : > { %1268 = vmatprep.subr.bf16.mxu0 %v1267_v62  ;;  %1300 = vmatprep.subr.bf16.mxu1 %v1299_v5 }
  0xa4   : > { %1270 = vmatpush1.bf16.msra.mxu0 %v1269_v3  ;;  %1302 = vmatpush3.bf16.msra.mxu1 %v1299_v5 }
  0xa5   : > { %1272 = vmatprep.subr.bf16.mxu0 %v1271_v8  ;;  %1304 = vmatprep.subr.bf16.mxu1 %v1303_v14 }
  0xa8   : > { %1274 = vmatpush1.bf16.msra.mxu0 %v1273_v12  ;;  %1306 = vmatpush3.bf16.msra.mxu1 %v1303_v14 }
  0xa9   : > { %1276 = vmatprep.subr.bf16.mxu0 %v1275_v17  ;;  %1308 = vmatprep.subr.bf16.mxu1 %v1307_v24 }
  0xac   : > { %1278 = vmatpush1.bf16.msra.mxu0 %v1277_v21  ;;  %1310 = vmatpush3.bf16.msra.mxu1 %v1307_v24 }
 0x161   : > { %v453_v29 = vpop.f32.mrb[0].mxu0  ;;  %v1141_v33 = vpop.f32.mrb[0].mxu1 }
 0x162   : > { %v455_v32 = vpop.f32.mrb[1].mxu0  ;;  %v542_v34 = vpop.f32.mrb[1].mxu1  ;;  %v597_v35 = vrot.slane %v1141_v33, 1  ;;  %v568_v41 = vrot.slane %v453_v29, 7 }
 0x163   : > { %v596_v36 = vrot.slane %v542_v34, 1 }
 0x165   : > { %v459_v38 = vpop.f32.mrb[2].mxu0  ;;  %v598_v42 = vsel %vm595_vm0, %v596_v36, %v597_v35  ;;  %v1144_v44 = vpop.f32.mrb[2].mxu1 }
 0x166   : > { %v569_v43 = vrot.slane %v459_v38, 7  ;;  %v461_v45 = vpop.f32.mrb[3].mxu0  ;;  %v601_v46 = vrot.slane %v1144_v44, 1  ;;  %v552_v47 = vpop.f32.mrb[3].mxu1 }
 0x167   : > { %v599_v51 = vrot.slane %v552_v47, 1 }
 0x168   : > { %v570_v48 = vsel %vm567_vm1, %v568_v41, %v569_v43  ;;  %v608_v56 = vsel %vm595_vm0, %v601_v46, %v596_v36 }
 0x169   : > { %v622_v52 = vadd.f32 %v570_v48, %v461_v45  ;;  %v465_v53 = vpop.f32.mrb[4].mxu0  ;;  %v600_v57 = vsel %vm595_vm0, %v597_v35, %v599_v51  ;;  %v602_v60 = vsel %vm595_vm0, %v599_v51, %v601_v46  ;;  %v620_v12 = vsel %vm1815_vm4, 0.0, %v608_v56  ;;  %v1059_v56 = vld [vmem:[%s1914_s4] ss:$0 sm:$0xff] }
 0x16a   : > { %v571_v58 = vrot.slane %v465_v53, 7  ;;  %v467_v59 = vpop.f32.mrb[5].mxu0  ;;  %v618_v62 = vsel %vm1799_vm2, 0.0, %v600_v57 }
 0x16b   : > { %v626_v63 = vadd.f32 %v622_v52, %v618_v62 }
 0x16c   : > { %v572_v1 = vsel %vm567_vm1, %v569_v43, %v571_v58 }
 0x16d   : > { %v589_v2 = vsel %vm1803_vm3, 0.0, %v572_v1  ;;  %v471_v3 = vpop.f32.mrb[6].mxu0  ;;  %v637_v19 = vadd.f32 %v1058_v15, %v626_v63 }
 0x16e   : > { %v623_v5 = vadd.f32 %v589_v2, %v467_v59  ;;  %v562_v7 = vrot.slane %v471_v3, 7  ;;  %v473_v8 = vpop.f32.mrb[7].mxu0 }
 0x16f   : > { %v641_v24 = vmax.f32 %v637_v19, 0.0 }
 0x170   : > { %v627_v9 = vadd.f32 %v623_v5, %v602_v60  ;;  %v578_v10 = vsel %vm567_vm1, %v562_v7, %v568_v41  ;;  %v573_v11 = vsel %vm567_vm1, %v571_v58, %v562_v7 }
 0x171   : > { %v587_v13 = vsel %vm1819_vm5, 0.0, %v578_v10  ;;  %v624_v14 = vadd.f32 %v573_v11, %v473_v8 }
 0x172   : > { %v621_v16 = vadd.f32 %v587_v13, %v455_v32  ;;  %v638_v21 = vadd.f32 %v1058_v15, %v627_v9 }
 0x173   : > { %v628_v17 = vadd.f32 %v624_v14, %v620_v12 }
 0x174   : > { %v625_v18 = vadd.f32 %v621_v16, %v598_v42  ;;  %v642_v27 = vmax.f32 %v638_v21, 0.0 }
 0x175   : > { %v639_v26 = vadd.f32 %v1058_v15, %v628_v17 }
 0x176   : > { %v636_v20 = vadd.f32 %v1058_v15, %v625_v18 }
 0x177   : > { %v643_v28 = vmax.f32 %v639_v26, 0.0 }
 0x178   : > { %v640_v22 = vmax.f32 %v636_v20, 0.0 }
 0x17a   : > { %757 = vmatmul.mubr.f32.vlgmr.msra.gmra.mrb[8].mxu0 %v640_v22  ;;  %1177 = vmatprep.mubr.f32.mxu1 %v640_v22 }
 0x17b   : > { %1178 = vmatmul.mubr.f32.vlgmr.msra.gmra.mrb[4].mxu1 %v641_v24  ;;  %762 = vmatprep.mubr.f32.mxu0 %v1550_v0 }
 0x17c   : > { %1180 = vmatprep.mubr.f32.mxu1 %v642_v27 }
 0x17e   : > { %763 = vmatmul.mubr.f32.gmra.mrb[10].mxu0 %v641_v24 }
 0x17f   : > { %1181 = vmatmul.mubr.f32.gmra.mrb[6].mxu1 %v643_v28  ;;  %768 = vmatprep.mubr.f32.mxu0 %v1550_v0 }
 0x182   : > { %769 = vmatmul.mubr.f32.gmra.mrb[12].mxu0 %v642_v27 }
 0x183   : > { %774 = vmatprep.mubr.f32.mxu0 %v1550_v0 }
 0x186   : > { %775 = vmatmul.mubr.f32.gmra.mrb[14].mxu0 %v643_v28 }
 0x24d   : > { %v758_v29 = vpop.f32.mrb[8].mxu0 }
 0x24e   : > { %v760_v31 = vpop.f32.mrb[9].mxu0  ;;  %v1179_v32 = vpop.f32.mrb[4].mxu1  ;;  %v872_v37 = vrot.slane %v758_v29, 7 }
 0x24f   : > { %v892_v33 = vrot.slane %v1179_v32, 1  ;;  %v847_v34 = vpop.f32.mrb[5].mxu1 }
 0x250   : > { %v891_v35 = vrot.slane %v847_v34, 1 }
 0x251   : > { %v764_v36 = vpop.f32.mrb[10].mxu0 }
 0x252   : > { %v893_v38 = vsel %vm595_vm0, %v891_v35, %v892_v33  ;;  %v873_v39 = vrot.slane %v764_v36, 7  ;;  %v766_v40 = vpop.f32.mrb[11].mxu0  ;;  %v1182_v41 = vpop.f32.mrb[6].mxu1 }
 0x253   : > { %v896_v42 = vrot.slane %v1182_v41, 1  ;;  %v857_v43 = vpop.f32.mrb[7].mxu1 }
 0x254   : > { %v874_v44 = vsel %vm567_vm1, %v872_v37, %v873_v39  ;;  %v894_v45 = vrot.slane %v857_v43, 1 }
 0x255   : > { %v909_v0 = vadd.f32 %v874_v44, %v766_v40  ;;  %v770_v46 = vpop.f32.mrb[12].mxu0  ;;  %v903_v47 = vsel %vm595_vm0, %v896_v42, %v891_v35 }
 0x256   : > { %v895_v48 = vsel %vm595_vm0, %v892_v33, %v894_v45  ;;  %v875_v51 = vrot.slane %v770_v46, 7  ;;  %v772_v52 = vpop.f32.mrb[13].mxu0  ;;  %v897_v53 = vsel %vm595_vm0, %v894_v45, %v896_v42  ;;  %v907_v11 = vsel %vm1815_vm4, 0.0, %v903_v47 }
 0x257   : > { %v905_v55 = vsel %vm1799_vm2, 0.0, %v895_v48 }
 0x258   : > { %v913_v57 = vadd.f32 %v909_v0, %v905_v55  ;;  %v876_v58 = vsel %vm567_vm1, %v873_v39, %v875_v51 }
 0x259   : > { %v885_v59 = vsel %vm1803_vm3, 0.0, %v876_v58  ;;  %v776_v60 = vpop.f32.mrb[14].mxu0 }
 0x25a   : > { %v924_v61 = vadd.f32 %v1059_v56, %v913_v57  ;;  %v910_v62 = vadd.f32 %v885_v59, %v772_v52  ;;  %v867_v63 = vrot.slane %v776_v60, 7  ;;  %v778_v1 = vpop.f32.mrb[15].mxu0 }
 0x25c   : > { %v928_v2 = vadd.f32 %v924_v61, %v1778_v23  ;;  %v914_v49 = vadd.f32 %v910_v62, %v897_v53  ;;  %v882_v3 = vsel %vm567_vm1, %v867_v63, %v872_v37  ;;  %v877_v5 = vsel %vm567_vm1, %v875_v51, %v867_v63 }
 0x25d   : > { %v883_v7 = vsel %vm1819_vm5, 0.0, %v882_v3  ;;  %v911_v8 = vadd.f32 %v877_v5, %v778_v1 }
 0x25e   : > { %v932_v54 = vmax.f32 %v928_v2, 0.0  ;;  %v925_v9 = vadd.f32 %v1059_v56, %v914_v49  ;;  %v908_v10 = vadd.f32 %v883_v7, %v760_v31 }
 0x25f   : > { %v915_v12 = vadd.f32 %v911_v8, %v907_v11 }
 0x260   : > { %936 = vst [vmem:[%s271_s11 + $0x8] sm:$0xff] %v932_v54  ;;  %v929_v23 = vadd.f32 %v925_v9, %v1781_v25  ;;  %v912_v13 = vadd.f32 %v908_v10, %v893_v38 }
 0x261   : > { %v926_v14 = vadd.f32 %v1059_v56, %v915_v12 }
 0x262   : > { %v933_v15 = vmax.f32 %v929_v23, 0.0  ;;  %v923_v6 = vadd.f32 %v1059_v56, %v912_v13 }
 0x263   : > { %v930_v16 = vadd.f32 %v926_v14, %v1788_v30 }
 0x264   : > { %937 = vst [vmem:[%s271_s11 + $0x10] sm:$0xff] %v933_v15  ;;  %v927_v4 = vadd.f32 %v923_v6, %v1774_v50 }
 0x265   : > { %v934_v17 = vmax.f32 %v930_v16, 0.0 }
 0x266   : > { %v931_v25 = vmax.f32 %v927_v4, 0.0 }
 0x267   : > { %938 = vst [vmem:[%s271_s11 + $0x18] sm:$0xff] %v934_v17 }
 0x268   : > { %935 = vst [vmem:[%s271_s11] sm:$0xff] %v931_v25 }
 0x269   : > { %1484 = shalt.err (!%p1481_p2)
}
 0x26a   : > { %s1485_s6 = scalar_lea.hbm %s1864_s9, 512  ;;  %s1489_s8 = scalar_lea.hbm %s1915_s5, 1024 }
 0x26b   : > { %p1486_p13 = scmp.ne.s32.totalorder %s1864_s9, %s1485_s6  ;;  %p1490_p4 = scmp.lt.u32.totalorder %s1864_s9, %s1915_s5 }
 0x26c   : > { %p1491_p5 = scmp.lt.u32.totalorder %s1489_s8, %s1485_s6  ;;  %p1493_p11 = scmp.lt.u32.totalorder %s1485_s6, %s1864_s9 }
 0x26d   : > { %p1487_p6 = pnand %p1486_p13, %p1937_p0 }
 0x26e   : > { %p1492_p8 = por %p1491_p5, %p1490_p4 }
 0x26f   : > { %p1488_p10 = pneg %p1487_p6 }
 0x270   : > { %p1494_p1 = por %p1493_p11, %p1492_p8 }
 0x272   : > { %p1495_p3 = pnand %p1494_p1, %p1488_p10 }
 0x274   : > { %1498 = shalt.err (!%p1495_p3)
}
 0x275   : > { %s1552_s28 = smov 128   ;;  %s1553_s15 = smov 8  }
 0x276   : > { %1321 = dma.vmem_to_hbm [thread:$0]  (%p1937_p0), %s1866_s30, 512, %s1864_s9, %s940_s22, %s1552_s28, %s1552_s28, %s1553_s15  }
 0x277 PF: > { %s968_s16 = sand.u32 1, %s1529_s18   ;;  %p1938_p7 = scmp.ne.s32.totalorder %s1920_s25, 0 }
 0x278   : > { %p1939_p9 = scmp.ge.s32.totalorder %s1541_s21, 2  ;;  %s969_s12 = scalar_lea.sflag [#allocation4], %s968_s16 }
 0x27a   : > { %p1335_p12 = pnand %p1939_p9, %p1938_p7 }
 0x27c   : > { %1524 = dma.done.wait (!%p1335_p12), %s969_s12, 512  }
 0x27d   : > { %1526 = vsyncadd (!%p1335_p12), %s969_s12, 4294966784  ;;  %p19_p2 = scmp.ge.s32.totalorder %s1694_s14, 4   ;;  %s1940_s18 = smov %s1533_s19 }
 0x27e   : > { %s1941_s19 = smov %s1537_s20  ;;  %s1942_s20 = smov %s1710_s27 }
 0x27f   : > { %s1943_s21 = smov %s1694_s14  ;;  %21 = sbr.rel (!%p19_p2) target bundleno = 6 (0x6), region = 93 }
 0x286   :  { %974 = vsyncpa [#allocation3], 1 }
 0x287   :  { %976 = vsyncpa [#allocation3 + $0x1], 1 }
 0x288   :  { %977 = vsyncpa [#allocation6], 1 }
 0x289   :  { %978 = vsyncpa [#allocation4], 1 }
 0x28a   :  { %980 = vsyncpa [#allocation4 + $0x1], 1 }

</bundles_post_ra>
